<compile_context>
chip_gen: v6e
topology: v6e:2x2x1
jax: 0.10.0
libtpu: 0.0.40
codegen_flags: <defaults>
</compile_context>

<pallas_src>
import functools
import math

import jax
import jax.numpy as jnp
from jax.experimental import pallas as pl
from jax.experimental.pallas import tpu as pltpu

PROJ_EPS = 1e-5
MIN_NORM = 1e-15
MAX_TANH_ARG = 15.0

_LANE = 128
_ROW_TILE = 256
_K_TILE = 512


def _round_up(v, m):
    return ((v + m - 1) // m) * m


def _pick_k_tile(in_pad):
    # largest multiple of 128 that divides in_pad and is <= _K_TILE
    m = in_pad // _LANE
    for q in range(min(m, _K_TILE // _LANE), 0, -1):
        if m % q == 0:
            return q * _LANE
    return _LANE


def _atanh(x):
    # clamped artanh written as a log (EUP-friendly); operates on (bm,1) cols.
    x = jnp.clip(x, -1.0 + 1e-7, 1.0 - 1e-7)
    return 0.5 * jnp.log((1.0 + x) / (1.0 - x))


def _row_norm(x):
    return jnp.sqrt(jnp.maximum(jnp.sum(x * x, axis=-1, keepdims=True), MIN_NORM))


def _recip(x, approx):
    if approx:
        return pl.reciprocal(x, approx=True)
    return 1.0 / x


def mobius_linear_kernel(x_ref, wt_ref, bh_ref, yy_ref, o_ref, acc_ref, xsq_ref,
                         *, c, c_out, out_pad, mm_dtype, approx):
    k = pl.program_id(1)
    nk = pl.num_programs(1)

    @pl.when(k == 0)
    def _():
        acc_ref[...] = jnp.zeros_like(acc_ref)
        xsq_ref[...] = jnp.zeros_like(xsq_ref)

    # --- K-tiled accumulation: mx (+ the extra W^T@bh column block) and ||x||^2 ---
    x_raw = x_ref[...]                                   # (bm, tk)
    x_f32 = x_raw.astype(jnp.float32)
    xsq_ref[...] += jnp.sum(x_f32 * x_f32, axis=-1, keepdims=True)
    acc_ref[...] += jnp.dot(x_raw.astype(mm_dtype), wt_ref[...],
                            preferred_element_type=jnp.float32)

    # --- epilogue: projections, radial rescale, mob_add (last K step only) ---
    @pl.when(k == nk - 1)
    def _():
        sqrt_c = math.sqrt(c)
        inv_sqrt_c_out = 1.0 / math.sqrt(c_out)
        maxnorm_c = (1.0 - PROJ_EPS) / sqrt_c
        maxnorm_co = (1.0 - PROJ_EPS) * inv_sqrt_c_out

        yy = yy_ref[0, 0]                                # scalar: c_out * ||bh||^2
        bh = bh_ref[...]                                 # (1, out_pad) f32

        # project x onto the curvature-c ball (as a per-row scale folded into
        # the already-computed matmul; projection commutes with the matmul).
        xsq = xsq_ref[...]                               # (bm,1)
        x_norm = jnp.sqrt(jnp.maximum(xsq, MIN_NORM))
        inv_x_norm = _recip(x_norm, approx)
        over_c = x_norm > maxnorm_c
        x_scale = jnp.where(over_c, maxnorm_c * inv_x_norm, 1.0)
        x_norm_p = jnp.minimum(x_norm, maxnorm_c)
        inv_x_norm_p = jnp.where(over_c, 1.0 / maxnorm_c, inv_x_norm)

        mx0 = acc_ref[:, :out_pad]                       # (bm, out_pad) = x @ W^T (unprojected x)
        mxbh0 = jnp.sum(acc_ref[:, out_pad:], axis=-1,   # (bm, 1) = x @ (W^T @ bh)
                        keepdims=True)

        mx0_norm = _row_norm(mx0)                        # XLU reduce #2 (of 2)
        inv_mx0_norm = _recip(mx0_norm, approx)
        mx_norm = x_scale * mx0_norm                     # = ||project(x) @ W^T||

        # mob_mat_mul radial rescale
        arg = mx_norm * inv_x_norm_p * _atanh(sqrt_c * x_norm_p)
        arg = jnp.clip(arg, -MAX_TANH_ARG, MAX_TANH_ARG)
        res_norm_pre = jnp.tanh(arg) * inv_sqrt_c_out    # analytic ||res|| pre-projection
        proj = jnp.where(
            res_norm_pre > maxnorm_co,
            maxnorm_co * _recip(jnp.maximum(res_norm_pre, MIN_NORM), approx),
            1.0)
        cs = res_norm_pre * proj * inv_mx0_norm          # res = cs * mx0 (x_scale cancels)
        res_norm = jnp.minimum(res_norm_pre, maxnorm_co)

        # mob_add(res, bh) on the curvature-c_out ball; no full-tile reductions.
        xx = c_out * res_norm * res_norm                 # (bm,1)
        xy = (2.0 * c_out) * cs * mxbh0                  # (bm,1)
        a = 1.0 + xy + yy
        b = 1.0 - xx

        denom = 1.0 + xy + xx * yy
        inv_denom = _recip(jnp.maximum(denom, MIN_NORM), approx)

        # ||num||^2 analytically: a^2||res||^2 + 2ab(res.bh) + b^2||bh||^2
        num_sq = (a * a * xx + a * b * xy + b * b * yy) * (1.0 / c_out)
        num_norm = jnp.sqrt(jnp.maximum(num_sq, MIN_NORM))
        out_norm = num_norm * inv_denom
        final_proj = jnp.where(
            out_norm > maxnorm_co,
            maxnorm_co * _recip(jnp.maximum(out_norm, MIN_NORM), approx),
            1.0)
        out_scale = inv_denom * final_proj               # (bm,1)

        s_mx = (a * cs) * out_scale                      # (bm,1)
        s_bh = b * out_scale                             # (bm,1)
        o_ref[...] = (mx0 * s_mx + bh * s_bh).astype(o_ref.dtype)


def prepare_mobius_linear(weight, bias, c=1.0, c_out=None,
                          matmul_dtype=jnp.bfloat16):
    """One-time (per layer) weight/bias preparation, hoisted out of the forward.

    Packs W^T (padded, cast to the MXU dtype) together with an extra 128-lane
    column block holding W^T @ exp_map_zero(bias), plus the padded bias point
    bh and the scalar yy = c_out*||bh||^2.
    """
    if c_out is None:
        c_out = c
    c = float(c)
    c_out = float(c_out)
    sqrt_c_out = math.sqrt(c_out)

    out_features, in_features = weight.shape
    wt = weight.T.astype(jnp.float32)                    # (in, out)

    # exp_map_zero(bias, c_out) + projection, f32.
    b = bias.astype(jnp.float32).reshape(1, out_features)
    b_norm = _row_norm(b)
    bh = jnp.tanh(jnp.clip(sqrt_c_out * b_norm, -MAX_TANH_ARG, MAX_TANH_ARG)) \
        * b / (sqrt_c_out * b_norm)
    bh_norm = _row_norm(bh)
    maxnorm_co = (1.0 - PROJ_EPS) / sqrt_c_out
    bh = jnp.where(bh_norm > maxnorm_co, bh / bh_norm * maxnorm_co, bh)
    bh_norm = jnp.minimum(bh_norm, maxnorm_co)
    yy = (c_out * bh_norm * bh_norm).reshape(1, 1).astype(jnp.float32)

    in_pad = _round_up(in_features, _LANE)
    out_pad = _round_up(out_features, _LANE)

    # augmented weight: [ W^T | W^T@bh (lane 0 of a 128-wide zero block) ]
    wbh = wt @ bh.reshape(out_features, 1)               # (in, 1)
    wt_p = jnp.pad(wt, ((0, in_pad - in_features), (0, out_pad - out_features)))
    extra = jnp.pad(wbh, ((0, in_pad - in_features), (0, _LANE - 1)))
    wt_aug = jnp.concatenate([wt_p, extra], axis=1).astype(matmul_dtype)

    bh_p = jnp.pad(bh, ((0, 0), (0, out_pad - out_features))).astype(jnp.float32)

    return dict(wt=wt_aug, bh=bh_p, yy=yy, c=c, c_out=c_out,
                in_features=in_features, out_features=out_features,
                in_pad=in_pad, out_pad=out_pad, matmul_dtype=matmul_dtype)


def mobius_linear_apply(x, params):
    """x: (..., in_features) -> (N, out_features), N = prod(leading dims)."""
    in_features = params["in_features"]
    out_features = params["out_features"]
    in_pad = params["in_pad"]
    out_pad = params["out_pad"]
    out_aug = out_pad + _LANE
    c = params["c"]
    c_out = params["c_out"]
    mm_dtype = params["matmul_dtype"]
    approx = jnp.dtype(mm_dtype) != jnp.dtype(jnp.float32)

    x2 = x.reshape(-1, in_features)
    n = x2.shape[0]
    if in_pad != in_features:                            # zero lane pad only if needed
        x2 = jnp.pad(x2, ((0, 0), (0, in_pad - in_features)))

    # Row tile: full 256-row MXU tile when there is enough work, otherwise split
    # so the single "parallel" axis still has >= 2 steps (v7x dual TensorCore).
    if n >= 2 * _ROW_TILE:
        bm = _ROW_TILE
    else:
        bm = min(_ROW_TILE, max(8, _round_up((n + 1) // 2, 8)))
    num_rows = pl.cdiv(n, bm)                            # partial last block masked

    tk = _pick_k_tile(in_pad)
    nk = in_pad // tk

    # VMEM budget: x (x2 buffers) + weight tiles + bh + out (x2) + scratch.
    x_item = jnp.dtype(x2.dtype).itemsize
    mm_item = jnp.dtype(mm_dtype).itemsize
    wt_bufs = 1 if nk == 1 else 2
    vmem_needed = (2 * bm * tk * x_item
                   + wt_bufs * tk * out_aug * mm_item
                   + out_pad * 4
                   + 2 * bm * out_pad * 4
                   + bm * out_aug * 4
                   + bm * _LANE * 4)
    vmem_limit = int(min(max(vmem_needed + (6 << 20), 32 << 20), 100 << 20))

    # Constant-index operands get a single buffer (the weight only when there is
    # a single K step, i.e. its index_map is grid-invariant).
    wt_kwargs = dict(pipeline_mode=pl.Buffered(1)) if nk == 1 else {}

    out = pl.pallas_call(
        functools.partial(mobius_linear_kernel, c=c, c_out=c_out,
                          out_pad=out_pad, mm_dtype=mm_dtype, approx=approx),
        out_shape=jax.ShapeDtypeStruct((n, out_pad), jnp.float32),
        grid_spec=pltpu.PrefetchScalarGridSpec(
            num_scalar_prefetch=0,
            grid=(num_rows, nk),
            in_specs=[
                pl.BlockSpec((bm, tk), lambda i, k: (i, k)),
                pl.BlockSpec((tk, out_aug), lambda i, k: (k, 0), **wt_kwargs),
                pl.BlockSpec((1, out_pad), lambda i, k: (0, 0),
                             pipeline_mode=pl.Buffered(1)),
                pl.BlockSpec(memory_space=pltpu.MemorySpace.SMEM),
            ],
            out_specs=pl.BlockSpec((bm, out_pad), lambda i, k: (i, 0)),
            scratch_shapes=[pltpu.VMEM((bm, out_aug), jnp.float32),
                            pltpu.VMEM((bm, 1), jnp.float32)],
        ),
        compiler_params=pltpu.CompilerParams(
            dimension_semantics=("parallel", "arbitrary"),
            vmem_limit_bytes=vmem_limit),
    )(x2, params["wt"], params["bh"], params["yy"])
    return out[:, :out_features]


def mobius_linear(x, weight, bias, c=1.0, c_out=None, matmul_dtype=jnp.bfloat16):
    """One-shot convenience wrapper. For repeated forwards, call
    prepare_mobius_linear() once and mobius_linear_apply() per call so the
    weight transpose/pad/cast is not re-streamed through HBM every time."""
    return mobius_linear_apply(
        x, prepare_mobius_linear(weight, bias, c, c_out, matmul_dtype))


def _mobius_linear_ref(x, weight, bias, c=1.0, c_out=None):
    """Pure-JAX reference (full reductions, full-tile divides)."""
    if c_out is None:
        c_out = c
    c = float(c)
    c_out = float(c_out)
    sqrt_c, sqrt_c_out = math.sqrt(c), math.sqrt(c_out)

    def project(v, cc):
        norm = _row_norm(v)
        maxn = (1.0 - PROJ_EPS) / math.sqrt(cc)
        return jnp.where(norm > maxn, v / norm * maxn, v)

    in_features = weight.shape[1]
    xf = x.reshape(-1, in_features).astype(jnp.float32)
    xf = project(xf, c)
    mx = xf @ weight.T.astype(jnp.float32)
    x_norm = _row_norm(xf)
    mx_norm = _row_norm(mx)
    arg = jnp.clip(mx_norm / x_norm * _atanh(sqrt_c * x_norm),
                   -MAX_TANH_ARG, MAX_TANH_ARG)
    res = project(jnp.tanh(arg) * mx / (mx_norm * sqrt_c_out), c_out)

    b = bias.astype(jnp.float32).reshape(1, -1)
    b_norm = _row_norm(b)
    bh = jnp.tanh(jnp.clip(sqrt_c_out * b_norm, -MAX_TANH_ARG, MAX_TANH_ARG)) \
        * b / (sqrt_c_out * b_norm)
    bh = project(bh, c_out)

    xy = 2.0 * c_out * jnp.sum(res * bh, axis=-1, keepdims=True)
    xx = c_out * jnp.sum(res * res, axis=-1, keepdims=True)
    yy = c_out * jnp.sum(bh * bh, axis=-1, keepdims=True)
    denom = jnp.maximum(1.0 + xy + xx * yy, MIN_NORM)
    num = (1.0 + xy + yy) * res + (1.0 - xx) * bh
    return project(num / denom, c_out)


if __name__ == "__main__":
    key = jax.random.PRNGKey(0)
    in_features, out_features = 32, 16
    batch_shape = (2, 4)                       # forward flattens leading dims

    kx, kw, kb = jax.random.split(key, 3)

    # nn.Linear-style reset_parameters: kaiming_uniform_(a=sqrt(5)) ->
    # U(-1/sqrt(fan_in), 1/sqrt(fan_in)); same bound for bias.
    bound = 1.0 / math.sqrt(in_features)
    weight = jax.random.uniform(kw, (out_features, in_features),
                                minval=-bound, maxval=bound, dtype=jnp.float32)
    bias = jax.random.uniform(kb, (out_features,),
                              minval=-bound, maxval=bound, dtype=jnp.float32)

    # Input points well inside the unit Poincare ball.
    x = 0.3 * jax.random.normal(kx, batch_shape + (in_features,), dtype=jnp.float32)
    x = x / (1.0 + jnp.linalg.norm(x, axis=-1, keepdims=True))

    n = batch_shape[0] * batch_shape[1]
    y_ref = _mobius_linear_ref(x, weight, bias, c=1.0)

    # f32 MXU path (exact reciprocals): strict check against the reference.
    params_f32 = prepare_mobius_linear(weight, bias, c=1.0,
                                       matmul_dtype=jnp.float32)
    y32 = mobius_linear_apply(x, params_f32)
    jax.block_until_ready(y32)
    assert y32.shape == (n, out_features)
    assert bool(jnp.all(jnp.isfinite(y32)))
    assert bool(jnp.allclose(y32, y_ref, atol=1e-4, rtol=1e-3)), \
        float(jnp.max(jnp.abs(y32 - y_ref)))

    # Default bf16 MXU path (+ EUP approx reciprocals): looser check.
    params_bf16 = prepare_mobius_linear(weight, bias, c=1.0)   # bf16 default
    y16 = mobius_linear_apply(x, params_bf16)
    jax.block_until_ready(y16)
    assert y16.shape == (n, out_features)
    assert bool(jnp.all(jnp.isfinite(y16)))
    assert bool(jnp.allclose(y16, y_ref, atol=1e-2, rtol=1e-2)), \
        float(jnp.max(jnp.abs(y16 - y_ref)))

    print("KERNEL_OK")
</pallas_src>

<mosaic_0001>
module attributes {stable_mosaic.version = 11 : i64} {
  func.func @mobius_linear_kernel(%arg0: i32, %arg1: i32, %arg2: memref<8x128xf32, #tpu.memory_space<vmem>>, %arg3: memref<128x256xf32, #tpu.memory_space<vmem>>, %arg4: memref<1x128xf32, #tpu.memory_space<vmem>>, %arg5: memref<1x1xf32, #tpu.memory_space<smem>>, %arg6: memref<8x128xf32, #tpu.memory_space<vmem>>, %arg7: memref<8x256xf32, #tpu.memory_space<vmem>>, %arg8: memref<8x1xf32, #tpu.memory_space<vmem>>) attributes {dimension_semantics = [#tpu.dimension_semantics<parallel>, #tpu.dimension_semantics<arbitrary>], iteration_bounds = array<i64: 1, 1>, scalar_prefetch = 0 : i64, scratch_operands = 2 : i64, tpu.core_type = #tpu.core_type<tc>, window_params = [{transform_indices = @transform_0, window_bounds = array<i64: 8, 128>}, {pipeline_mode = #tpu.pipeline_mode<synchronous>, transform_indices = @transform_1, window_bounds = array<i64: 128, 256>}, {pipeline_mode = #tpu.pipeline_mode<synchronous>, transform_indices = @transform_2, window_bounds = array<i64: 1, 128>}, {transform_indices = @transform_3, window_bounds = array<i64: 1, 1>}, {transform_indices = @transform_4, window_bounds = array<i64: 8, 128>}]} {
    %c0_i32 = arith.constant 0 : i32
    %0 = arith.cmpi eq, %arg1, %c0_i32 : i32
    %1 = arith.extui %0 : i1 to i32
    %c0_i32_0 = arith.constant 0 : i32
    %2 = arith.cmpi ne, %1, %c0_i32_0 : i32
    scf.if %2 {
      %cst_15 = arith.constant 0.000000e+00 : f32
      %18 = vector.broadcast %cst_15 : f32 to vector<8x256xf32>
      %c0_16 = arith.constant 0 : index
      %c0_17 = arith.constant 0 : index
      %19 = vector.load %arg7[%c0_16, %c0_17] : memref<8x256xf32, #tpu.memory_space<vmem>>, vector<8x256xf32>
      tpu.vector_store %arg7[%c0_16, %c0_17], %18 {strides = array<i32>} : memref<8x256xf32, #tpu.memory_space<vmem>>, vector<8x256xf32>,
      %cst_18 = arith.constant 0.000000e+00 : f32
      %20 = vector.broadcast %cst_18 : f32 to vector<8x1xf32>
      %c0_19 = arith.constant 0 : index
      %c0_20 = arith.constant 0 : index
      %21 = vector.load %arg8[%c0_19, %c0_20] : memref<8x1xf32, #tpu.memory_space<vmem>>, vector<8x1xf32>
      tpu.vector_store %arg8[%c0_19, %c0_20], %20 {strides = array<i32>} : memref<8x1xf32, #tpu.memory_space<vmem>>, vector<8x1xf32>,
    } else {
    }
    %c0 = arith.constant 0 : index
    %c0_1 = arith.constant 0 : index
    %3 = vector.load %arg2[%c0, %c0_1] : memref<8x128xf32, #tpu.memory_space<vmem>>, vector<8x128xf32>
    %c0_2 = arith.constant 0 : index
    %c0_3 = arith.constant 0 : index
    %4 = vector.load %arg8[%c0_2, %c0_3] : memref<8x1xf32, #tpu.memory_space<vmem>>, vector<8x1xf32>
    %5 = arith.mulf %3, %3 : vector<8x128xf32>
    %cst = arith.constant dense<0.000000e+00> : vector<8xf32>
    %6 = vector.multi_reduction <add>, %5, %cst [1] : vector<8x128xf32> to vector<8xf32>
    %7 = vector.shape_cast %6 : vector<8xf32> to vector<8x1xf32>
    %8 = arith.addf %4, %7 : vector<8x1xf32>
    %c0_4 = arith.constant 0 : index
    %c0_5 = arith.constant 0 : index
    %9 = vector.load %arg8[%c0_4, %c0_5] : memref<8x1xf32, #tpu.memory_space<vmem>>, vector<8x1xf32>
    tpu.vector_store %arg8[%c0_4, %c0_5], %8 {strides = array<i32>} : memref<8x1xf32, #tpu.memory_space<vmem>>, vector<8x1xf32>,
    %c0_6 = arith.constant 0 : index
    %c0_7 = arith.constant 0 : index
    %10 = vector.load %arg7[%c0_6, %c0_7] : memref<8x256xf32, #tpu.memory_space<vmem>>, vector<8x256xf32>
    %c0_8 = arith.constant 0 : index
    %c0_9 = arith.constant 0 : index
    %11 = vector.load %arg3[%c0_8, %c0_9] : memref<128x256xf32, #tpu.memory_space<vmem>>, vector<128x256xf32>
    %cst_10 = arith.constant dense<0.000000e+00> : vector<8x256xf32>
    %12 = tpu.matmul %3, %11, %cst_10 {dimension_numbers = #tpu.dot_dimension_numbers<[1], [0], [0], [1], [0, 0, 1, 1], [], []>} : vector<8x128xf32>, vector<128x256xf32>, vector<8x256xf32> -> vector<8x256xf32>
    %13 = arith.addf %10, %12 : vector<8x256xf32>
    %c0_11 = arith.constant 0 : index
    %c0_12 = arith.constant 0 : index
    %14 = vector.load %arg7[%c0_11, %c0_12] : memref<8x256xf32, #tpu.memory_space<vmem>>, vector<8x256xf32>
    tpu.vector_store %arg7[%c0_11, %c0_12], %13 {strides = array<i32>} : memref<8x256xf32, #tpu.memory_space<vmem>>, vector<8x256xf32>,
    %c0_i32_13 = arith.constant 0 : i32
    %15 = arith.cmpi eq, %arg1, %c0_i32_13 : i32
    %16 = arith.extui %15 : i1 to i32
    %c0_i32_14 = arith.constant 0 : i32
    %17 = arith.cmpi ne, %16, %c0_i32_14 : i32
    scf.if %17 {
      %c0_15 = arith.constant 0 : index
      %c0_16 = arith.constant 0 : index
      %18 = memref.load %arg5[%c0_15, %c0_16] : memref<1x1xf32, #tpu.memory_space<smem>>
      %c0_17 = arith.constant 0 : index
      %c0_18 = arith.constant 0 : index
      %19 = vector.load %arg4[%c0_17, %c0_18] : memref<1x128xf32, #tpu.memory_space<vmem>>, vector<1x128xf32>
      %c0_19 = arith.constant 0 : index
      %c0_20 = arith.constant 0 : index
      %20 = vector.load %arg8[%c0_19, %c0_20] : memref<8x1xf32, #tpu.memory_space<vmem>>, vector<8x1xf32>
      %cst_21 = arith.constant 1.000000e-15 : f32
      %21 = vector.broadcast %cst_21 : f32 to vector<8x1xf32>
      %22 = arith.maximumf %20, %21 : vector<8x1xf32>
      %23 = math.sqrt %22 : vector<8x1xf32>
      %cst_22 = arith.constant 1.000000e+00 : f32
      %24 = vector.broadcast %cst_22 : f32 to vector<8x1xf32>
      %25 = arith.divf %24, %23 : vector<8x1xf32>
      %cst_23 = arith.constant 0.999989986 : f32
      %26 = vector.broadcast %cst_23 : f32 to vector<8x1xf32>
      %27 = arith.cmpf ogt, %23, %26 : vector<8x1xf32>
      %cst_24 = arith.constant 0.999989986 : f32
      %28 = vector.broadcast %cst_24 : f32 to vector<8x1xf32>
      %29 = arith.mulf %28, %25 : vector<8x1xf32>
      %cst_25 = arith.constant 1.000000e+00 : f32
      %30 = vector.broadcast %cst_25 : f32 to vector<8x1xf32>
      %31 = arith.select %27, %29, %30 : vector<8x1xi1>, vector<8x1xf32>
      %cst_26 = arith.constant 0.999989986 : f32
      %32 = vector.broadcast %cst_26 : f32 to vector<8x1xf32>
      %33 = arith.minimumf %23, %32 : vector<8x1xf32>
      %cst_27 = arith.constant 1.000010e+00 : f32
      %34 = vector.broadcast %cst_27 : f32 to vector<8x1xf32>
      %35 = arith.select %27, %34, %25 : vector<8x1xi1>, vector<8x1xf32>
      %c0_28 = arith.constant 0 : index
      %c0_29 = arith.constant 0 : index
      %36 = vector.load %arg7[%c0_28, %c0_29] : memref<8x256xf32, #tpu.memory_space<vmem>>, vector<8x128xf32>
      %c0_30 = arith.constant 0 : index
      %c128 = arith.constant 128 : index
      %37 = vector.load %arg7[%c0_30, %c128] : memref<8x256xf32, #tpu.memory_space<vmem>>, vector<8x128xf32>
      %cst_31 = arith.constant dense<0.000000e+00> : vector<8xf32>
      %38 = vector.multi_reduction <add>, %37, %cst_31 [1] : vector<8x128xf32> to vector<8xf32>
      %39 = vector.shape_cast %38 : vector<8xf32> to vector<8x1xf32>
      %40 = arith.mulf %36, %36 : vector<8x128xf32>
      %cst_32 = arith.constant dense<0.000000e+00> : vector<8xf32>
      %41 = vector.multi_reduction <add>, %40, %cst_32 [1] : vector<8x128xf32> to vector<8xf32>
      %42 = vector.shape_cast %41 : vector<8xf32> to vector<8x1xf32>
      %cst_33 = arith.constant 1.000000e-15 : f32
      %43 = vector.broadcast %cst_33 : f32 to vector<8x1xf32>
      %44 = arith.maximumf %42, %43 : vector<8x1xf32>
      %45 = math.sqrt %44 : vector<8x1xf32>
      %cst_34 = arith.constant 1.000000e+00 : f32
      %46 = vector.broadcast %cst_34 : f32 to vector<8x1xf32>
      %47 = arith.divf %46, %45 : vector<8x1xf32>
      %48 = arith.mulf %31, %45 : vector<8x1xf32>
      %49 = arith.mulf %48, %35 : vector<8x1xf32>
      %cst_35 = arith.constant 1.000000e+00 : f32
      %50 = vector.broadcast %cst_35 : f32 to vector<8x1xf32>
      %51 = arith.mulf %50, %33 : vector<8x1xf32>
      %cst_36 = arith.constant -0.99999988 : f32
      %cst_37 = arith.constant 0.99999988 : f32
      %52 = vector.broadcast %cst_36 : f32 to vector<8x1xf32>
      %53 = arith.maximumf %52, %51 : vector<8x1xf32>
      %54 = vector.broadcast %cst_37 : f32 to vector<8x1xf32>
      %55 = arith.minimumf %54, %53 : vector<8x1xf32>
      %cst_38 = arith.constant 1.000000e+00 : f32
      %56 = vector.broadcast %cst_38 : f32 to vector<8x1xf32>
      %57 = arith.addf %56, %55 : vector<8x1xf32>
      %cst_39 = arith.constant 1.000000e+00 : f32
      %58 = vector.broadcast %cst_39 : f32 to vector<8x1xf32>
      %59 = arith.subf %58, %55 : vector<8x1xf32>
      %60 = arith.divf %57, %59 : vector<8x1xf32>
      %61 = math.log %60 : vector<8x1xf32>
      %cst_40 = arith.constant 5.000000e-01 : f32
      %62 = vector.broadcast %cst_40 : f32 to vector<8x1xf32>
      %63 = arith.mulf %62, %61 : vector<8x1xf32>
      %64 = arith.mulf %49, %63 : vector<8x1xf32>
      %cst_41 = arith.constant -1.500000e+01 : f32
      %cst_42 = arith.constant 1.500000e+01 : f32
      %65 = vector.broadcast %cst_41 : f32 to vector<8x1xf32>
      %66 = arith.maximumf %65, %64 : vector<8x1xf32>
      %67 = vector.broadcast %cst_42 : f32 to vector<8x1xf32>
      %68 = arith.minimumf %67, %66 : vector<8x1xf32>
      %69 = math.tanh %68 : vector<8x1xf32>
      %cst_43 = arith.constant 1.000000e+00 : f32
      %70 = vector.broadcast %cst_43 : f32 to vector<8x1xf32>
      %71 = arith.mulf %69, %70 : vector<8x1xf32>
      %cst_44 = arith.constant 0.999989986 : f32
      %72 = vector.broadcast %cst_44 : f32 to vector<8x1xf32>
      %73 = arith.cmpf ogt, %71, %72 : vector<8x1xf32>
      %cst_45 = arith.constant 1.000000e-15 : f32
      %74 = vector.broadcast %cst_45 : f32 to vector<8x1xf32>
      %75 = arith.maximumf %71, %74 : vector<8x1xf32>
      %cst_46 = arith.constant 1.000000e+00 : f32
      %76 = vector.broadcast %cst_46 : f32 to vector<8x1xf32>
      %77 = arith.divf %76, %75 : vector<8x1xf32>
      %cst_47 = arith.constant 0.999989986 : f32
      %78 = vector.broadcast %cst_47 : f32 to vector<8x1xf32>
      %79 = arith.mulf %78, %77 : vector<8x1xf32>
      %cst_48 = arith.constant 1.000000e+00 : f32
      %80 = vector.broadcast %cst_48 : f32 to vector<8x1xf32>
      %81 = arith.select %73, %79, %80 : vector<8x1xi1>, vector<8x1xf32>
      %82 = arith.mulf %71, %81 : vector<8x1xf32>
      %83 = arith.mulf %82, %47 : vector<8x1xf32>
      %cst_49 = arith.constant 0.999989986 : f32
      %84 = vector.broadcast %cst_49 : f32 to vector<8x1xf32>
      %85 = arith.minimumf %71, %84 : vector<8x1xf32>
      %cst_50 = arith.constant 1.000000e+00 : f32
      %86 = vector.broadcast %cst_50 : f32 to vector<8x1xf32>
      %87 = arith.mulf %86, %85 : vector<8x1xf32>
      %88 = arith.mulf %87, %85 : vector<8x1xf32>
      %cst_51 = arith.constant 2.000000e+00 : f32
      %89 = vector.broadcast %cst_51 : f32 to vector<8x1xf32>
      %90 = arith.mulf %89, %83 : vector<8x1xf32>
      %91 = arith.mulf %90, %39 : vector<8x1xf32>
      %cst_52 = arith.constant 1.000000e+00 : f32
      %92 = vector.broadcast %cst_52 : f32 to vector<8x1xf32>
      %93 = arith.addf %92, %91 : vector<8x1xf32>
      %94 = vector.broadcast %18 : f32 to vector<8x1xf32>
      %95 = arith.addf %93, %94 : vector<8x1xf32>
      %cst_53 = arith.constant 1.000000e+00 : f32
      %96 = vector.broadcast %cst_53 : f32 to vector<8x1xf32>
      %97 = arith.subf %96, %88 : vector<8x1xf32>
      %cst_54 = arith.constant 1.000000e+00 : f32
      %98 = vector.broadcast %cst_54 : f32 to vector<8x1xf32>
      %99 = arith.addf %98, %91 : vector<8x1xf32>
      %100 = vector.broadcast %18 : f32 to vector<8x1xf32>
      %101 = arith.mulf %88, %100 : vector<8x1xf32>
      %102 = arith.addf %99, %101 : vector<8x1xf32>
      %cst_55 = arith.constant 1.000000e-15 : f32
      %103 = vector.broadcast %cst_55 : f32 to vector<8x1xf32>
      %104 = arith.maximumf %102, %103 : vector<8x1xf32>
      %cst_56 = arith.constant 1.000000e+00 : f32
      %105 = vector.broadcast %cst_56 : f32 to vector<8x1xf32>
      %106 = arith.divf %105, %104 : vector<8x1xf32>
      %107 = arith.mulf %95, %95 : vector<8x1xf32>
      %108 = arith.mulf %107, %88 : vector<8x1xf32>
      %109 = arith.mulf %95, %97 : vector<8x1xf32>
      %110 = arith.mulf %109, %91 : vector<8x1xf32>
      %111 = arith.addf %108, %110 : vector<8x1xf32>
      %112 = arith.mulf %97, %97 : vector<8x1xf32>
      %113 = vector.broadcast %18 : f32 to vector<8x1xf32>
      %114 = arith.mulf %112, %113 : vector<8x1xf32>
      %115 = arith.addf %111, %114 : vector<8x1xf32>
      %cst_57 = arith.constant 1.000000e+00 : f32
      %116 = vector.broadcast %cst_57 : f32 to vector<8x1xf32>
      %117 = arith.mulf %115, %116 : vector<8x1xf32>
      %cst_58 = arith.constant 1.000000e-15 : f32
      %118 = vector.broadcast %cst_58 : f32 to vector<8x1xf32>
      %119 = arith.maximumf %117, %118 : vector<8x1xf32>
      %120 = math.sqrt %119 : vector<8x1xf32>
      %121 = arith.mulf %120, %106 : vector<8x1xf32>
      %cst_59 = arith.constant 0.999989986 : f32
      %122 = vector.broadcast %cst_59 : f32 to vector<8x1xf32>
      %123 = arith.cmpf ogt, %121, %122 : vector<8x1xf32>
      %cst_60 = arith.constant 1.000000e-15 : f32
      %124 = vector.broadcast %cst_60 : f32 to vector<8x1xf32>
      %125 = arith.maximumf %121, %124 : vector<8x1xf32>
      %cst_61 = arith.constant 1.000000e+00 : f32
      %126 = vector.broadcast %cst_61 : f32 to vector<8x1xf32>
      %127 = arith.divf %126, %125 : vector<8x1xf32>
      %cst_62 = arith.constant 0.999989986 : f32
      %128 = vector.broadcast %cst_62 : f32 to vector<8x1xf32>
      %129 = arith.mulf %128, %127 : vector<8x1xf32>
      %cst_63 = arith.constant 1.000000e+00 : f32
      %130 = vector.broadcast %cst_63 : f32 to vector<8x1xf32>
      %131 = arith.select %123, %129, %130 : vector<8x1xi1>, vector<8x1xf32>
      %132 = arith.mulf %106, %131 : vector<8x1xf32>
      %133 = arith.mulf %95, %83 : vector<8x1xf32>
      %134 = arith.mulf %133, %132 : vector<8x1xf32>
      %135 = arith.mulf %97, %132 : vector<8x1xf32>
      %136 = vector.broadcast %134 : vector<8x1xf32> to vector<8x128xf32>
      %137 = arith.mulf %36, %136 : vector<8x128xf32>
      %138 = vector.broadcast %19 : vector<1x128xf32> to vector<8x128xf32>
      %139 = vector.broadcast %135 : vector<8x1xf32> to vector<8x128xf32>
      %140 = arith.mulf %138, %139 : vector<8x128xf32>
      %141 = arith.addf %137, %140 : vector<8x128xf32>
      %c0_64 = arith.constant 0 : index
      %c0_65 = arith.constant 0 : index
      %142 = vector.load %arg6[%c0_64, %c0_65] : memref<8x128xf32, #tpu.memory_space<vmem>>, vector<8x128xf32>
      tpu.vector_store %arg6[%c0_64, %c0_65], %141 {strides = array<i32>} : memref<8x128xf32, #tpu.memory_space<vmem>>, vector<8x128xf32>,
    } else {
    }
    return
  }
  func.func @transform_0(%arg0: i32, %arg1: i32) -> (i32, i32) {
    %c0_i32 = arith.constant 0 : i32
    return %arg0, %arg1 : i32, i32
  }
  func.func @transform_1(%arg0: i32, %arg1: i32) -> (i32, i32) {
    %c0_i32 = arith.constant 0 : i32
    %c0_i32_0 = arith.constant 0 : i32
    return %arg1, %c0_i32 : i32, i32
  }
  func.func @transform_2(%arg0: i32, %arg1: i32) -> (i32, i32) {
    %c0_i32 = arith.constant 0 : i32
    %c0_i32_0 = arith.constant 0 : i32
    %c0_i32_1 = arith.constant 0 : i32
    return %c0_i32, %c0_i32_0 : i32, i32
  }
  func.func @transform_3(%arg0: i32, %arg1: i32) -> (i32, i32) {
    %c0_i32 = arith.constant 0 : i32
    %c0_i32_0 = arith.constant 0 : i32
    %c0_i32_1 = arith.constant 0 : i32
    return %c0_i32, %c0_i32_0 : i32, i32
  }
  func.func @transform_4(%arg0: i32, %arg1: i32) -> (i32, i32) {
    %c0_i32 = arith.constant 0 : i32
    %c0_i32_0 = arith.constant 0 : i32
    return %arg0, %c0_i32 : i32, i32
  }
}

</mosaic_0001>

<bundles_post_ra>
// kernel: tpu_custom_call.1
= control target key start
LH: loop header
LB: loop body
LE: loop exit
PB: predicated region body
PF: predicated region fallthrough
CT: control target
= control target key end

     0   :  { %10 = vsyncpa [#allocation6], 0  ;;  %s461_s0 = inlined_call_operand.hbm [shape: f32[8,128], index: 0, kind: input, shape index: {}]   ;;  %s462_s1 = inlined_call_operand.hbm [shape: f32[128,256], index: 1, kind: input, shape index: {}]   ;;  %s463_s2 = inlined_call_operand.vmem [shape: f32[1,128], index: 2, kind: input, shape index: {}]   ;;  %s464_s3 = inlined_call_operand.<no memory space> [shape: f32[1,1], index: 3, kind: input, shape index: {}]   ;;  %s465_s4 = inlined_call_operand.hbm [shape: f32[8,128], index: 4, kind: output, shape index: {}]  }
   0x1   :  { %11 = vsyncpa [#allocation9], 0 }
   0x2   :  { %12 = vsyncpa [#allocation7], 0  ;;  %s407_s15 = smov [#allocation5]   ;;  %s408_s17 = smov [#allocation8]  }
   0x3   :  { %s19_s16 = sshll.u32 %s407_s15, 4  ;;  %s28_s18 = sshll.u32 %s408_s17, 4  ;;  %s20_s16 = int_to_ptr.vmem [resolvable:$true] %s19_s16  ;;  %s29_s18 = int_to_ptr.vmem [resolvable:$true] %s28_s18 }
   0x4   :  { %s349_s19 = scalar_lea.vmem %s20_s16, 128  ;;  %p354_p1 = scmp.lt.s32.totalorder %s20_s16, %s20_s16 }
   0x5   :  { %p350_p0 = scmp.ne.s32.totalorder %s20_s16, %s349_s19  ;;  %p355_p2 = scmp.lt.s32.totalorder %s349_s19, %s349_s19 }
   0x7   :  { %p356_p3 = por %p355_p2, %p354_p1 }
   0x9   :  { %p357_p4 = pnand %p356_p3, %p350_p0 }
   0xb   :  { %360 = shalt.err (!%p357_p4)
}
   0xc   :  { %22 = dma.hbm_to_vmem [thread:$0]  %s461_s0, 128, %s20_s16, [#allocation6]  }
   0xd   :  { %s369_s22 = scalar_lea.vmem %s29_s18, 4096  ;;  %p374_p6 = scmp.lt.s32.totalorder %s29_s18, %s29_s18 }
   0xe   :  { %p370_p5 = scmp.ne.s32.totalorder %s29_s18, %s369_s22  ;;  %p375_p7 = scmp.lt.s32.totalorder %s369_s22, %s369_s22 }
  0x10   :  { %p376_p8 = por %p375_p7, %p374_p6 }
  0x12   :  { %p377_p9 = pnand %p376_p8, %p370_p5 }
  0x14   :  { %380 = shalt.err (!%p377_p9)
}
  0x15   :  { %s409_s23 = smov 256   ;;  %s410_s24 = smov 16  }
  0x16   :  { %34 = dma.hbm_to_vmem [thread:$0]  %s462_s1, 4096, %s29_s18, [#allocation9], %s409_s23, %s409_s23, %s410_s24  }
  0x17   :  { %401 = dma.done.wait [#allocation6], 128  }
  0x18   :  { %402 = vsyncadd [#allocation6], 4294967168 }
  0x19   :  { %403 = dma.done.wait [#allocation9], 4096  }
  0x1a   :  { %404 = vsyncadd [#allocation9], 4294963200  ;;  %vm51_vm0 = vcmask 7168   ;;  %v411_v0 = vmov 0.0   ;;  %v94_v1 = vld [vmem:[#allocation8 + $0xf8] sm:$0xff]  ;;  %v93_v2 = vld [vmem:[#allocation8 + $0xf0] sm:$0xff] }
  0x1b   :  { %52 = vst.msk [vmem:[#allocation3] sm:$0xff] %vm51_vm0, %v411_v0  ;;  %159 = vmatprep.mubr.f32.mxu0 %v411_v0  ;;  %v92_v3 = vld [vmem:[#allocation8 + $0xe8] sm:$0xff]  ;;  %95 = vmatprep.subr.mxu0 %v94_v1  ;;  %v91_v4 = vld [vmem:[#allocation8 + $0xe0] sm:$0xff]  ;;  %v90_v5 = vld [vmem:[#allocation8 + $0xd8] sm:$0xff]  ;;  %v412_v41 = vmov 0   ;;  %s413_s28 = smov [#allocation10]  }
  0x1c   :  { %96 = vmatpush1.msra.mxu0 %v93_v2  ;;  %v89_v6 = vld [vmem:[#allocation8 + $0xd0] sm:$0xff]  ;;  %v88_v7 = vld [vmem:[#allocation8 + $0xc8] sm:$0xff]  ;;  %v87_v8 = vld [vmem:[#allocation8 + $0xc0] sm:$0xff]  ;;  %318 = vset.pattern.permute.xlu0 %v412_v41  ;;  %s297_s29 = sshll.u32 %s413_s28, 4  ;;  %s298_s29 = int_to_ptr.vmem [resolvable:$true] %s297_s29 }
  0x1d   :  { %97 = vmatprep.subr.mxu0 %v92_v3  ;;  %v86_v9 = vld [vmem:[#allocation8 + $0xb8] sm:$0xff]  ;;  %v85_v10 = vld [vmem:[#allocation8 + $0xb0] sm:$0xff]  ;;  %v84_v11 = vld [vmem:[#allocation8 + $0xa8] sm:$0xff]  ;;  %317 = vset.pattern.permute.xlu1 %v412_v41  ;;  %s381_s30 = scalar_lea.vmem %s298_s29, 128  ;;  %p386_p11 = scmp.lt.s32.totalorder %s298_s29, %s298_s29 }
  0x1e   :  { %98 = vmatpush1.msra.mxu0 %v91_v4  ;;  %v83_v12 = vld [vmem:[#allocation8 + $0xa0] sm:$0xff]  ;;  %v82_v13 = vld [vmem:[#allocation8 + $0x98] sm:$0xff]  ;;  %v81_v15 = vld [vmem:[#allocation8 + $0x90] sm:$0xff]  ;;  %p382_p10 = scmp.ne.s32.totalorder %s298_s29, %s381_s30  ;;  %p387_p12 = scmp.lt.s32.totalorder %s381_s30, %s381_s30 }
  0x1f   :  { %99 = vmatprep.subr.mxu0 %v90_v5  ;;  %v53_v14 = vld [vmem:[#allocation5] sm:$0xff]  ;;  %v80_v17 = vld [vmem:[#allocation8 + $0x88] sm:$0xff]  ;;  %v79_v18 = vld [vmem:[#allocation8 + $0x80] sm:$0xff] }
  0x20   :  { %100 = vmatpush1.msra.mxu0 %v89_v6  ;;  %v55_v16 = vmul.f32 %v53_v14, %v53_v14  ;;  %v78_v19 = vld [vmem:[#allocation8 + $0x78] sm:$0xff]  ;;  %v77_v20 = vld [vmem:[#allocation8 + $0x70] sm:$0xff]  ;;  %v76_v21 = vld [vmem:[#allocation8 + $0x68] sm:$0xff]  ;;  %p388_p13 = por %p387_p12, %p386_p11 }
  0x21   :  { %101 = vmatprep.subr.mxu0 %v88_v7  ;;  %v75_v22 = vld [vmem:[#allocation8 + $0x60] sm:$0xff]  ;;  %v74_v23 = vld [vmem:[#allocation8 + $0x58] sm:$0xff]  ;;  %v73_v24 = vld [vmem:[#allocation8 + $0x50] sm:$0xff] }
  0x22   :  { %102 = vmatpush1.msra.mxu0 %v87_v8  ;;  %56 = vadd.xlane.f32.xlu0 %v55_v16  ;;  %v72_v25 = vld [vmem:[#allocation8 + $0x48] sm:$0xff]  ;;  %v71_v26 = vld [vmem:[#allocation8 + $0x40] sm:$0xff]  ;;  %v70_v27 = vld [vmem:[#allocation8 + $0x38] sm:$0xff]  ;;  %p389_p0 = pnand %p388_p13, %p382_p10 }
  0x23   :  { %103 = vmatprep.subr.mxu0 %v86_v9  ;;  %v69_v28 = vld [vmem:[#allocation8 + $0x30] sm:$0xff]  ;;  %v68_v29 = vld [vmem:[#allocation8 + $0x28] sm:$0xff]  ;;  %v67_v30 = vld [vmem:[#allocation8 + $0x20] sm:$0xff] }
  0x24   :  { %104 = vmatpush1.msra.mxu0 %v85_v10  ;;  %v66_v31 = vld [vmem:[#allocation8 + $0x18] sm:$0xff]  ;;  %v65_v32 = vld [vmem:[#allocation8 + $0x10] sm:$0xff]  ;;  %v64_v33 = vld [vmem:[#allocation8 + $0x8] sm:$0xff] }
  0x25   :  { %105 = vmatprep.subr.mxu0 %v84_v11  ;;  %v63_v34 = vld [vmem:[#allocation8] sm:$0xff]  ;;  %v54_v35 = vld [vmem:[#allocation3] sm:$0xff] }
  0x26   :  { %106 = vmatpush1.msra.mxu0 %v83_v12 }
  0x27   :  { %107 = vmatprep.subr.mxu0 %v82_v13 }
  0x28   :  { %108 = vmatpush1.msra.mxu0 %v81_v15 }
  0x29   :  { %109 = vmatprep.subr.mxu0 %v80_v17 }
  0x2a   :  { %110 = vmatpush1.msra.mxu0 %v79_v18 }
  0x2b   :  { %111 = vmatprep.subr.mxu0 %v78_v19 }
  0x2c   :  { %112 = vmatpush1.msra.mxu0 %v77_v20 }
  0x2d   :  { %113 = vmatprep.subr.mxu0 %v76_v21 }
  0x2e   :  { %114 = vmatpush1.msra.mxu0 %v75_v22 }
  0x2f   :  { %115 = vmatprep.subr.mxu0 %v74_v23 }
  0x30   :  { %116 = vmatpush1.msra.mxu0 %v73_v24  ;;  %v236_v24 = vstv %s464_s3 }
  0x31   :  { %117 = vmatprep.subr.mxu0 %v72_v25 }
  0x32   :  { %118 = vmatpush1.msra.mxu0 %v71_v26 }
  0x33   :  { %119 = vmatprep.subr.mxu0 %v70_v27 }
  0x34   :  { %120 = vmatpush1.msra.mxu0 %v69_v28 }
  0x35   :  { %121 = vmatprep.subr.mxu0 %v68_v29 }
  0x36   :  { %122 = vmatpush1.msra.mxu0 %v67_v30 }
  0x37   :  { %123 = vmatprep.subr.mxu0 %v66_v31 }
  0x38   :  { %124 = vmatpush1.msra.mxu0 %v65_v32 }
  0x39   :  { %125 = vmatprep.subr.mxu0 %v64_v33 }
  0x3a   :  { %126 = vmatpush1.msra.mxu0 %v63_v34 }
  0x3b   :  { %160 = vmatmul.mubr.f32.vlgmr.msra.gmra.mxu0 %v53_v14 }
  0xab   :  { %v57_v36 = vpop.xlane.xlu0 %56 }
  0xac   :  { %v58_v37 = vadd.f32 %v57_v36, %v54_v35 }
  0xae   :  { %60 = vst.msk [vmem:[#allocation3] sm:$0xff] %vm51_vm0, %v58_v37 }
  0xb5   :  { %v175_v42 = vld [vmem:[#allocation3] sm:$0xff] }
  0xb6   :  { %v176_v43 = vmax.f32 %v175_v42, 1e-15 }
  0xb8   :  { %319 = vrsqrt.f32 %v176_v43  ;;  %vm179_vm1 = vcmp.eq.f32.partialorder %v176_v43, inf  ;;  %v182_v46 = vand.u32 2147483648, %v176_v43  ;;  %vm181_vm2 = vcmp.eq.f32.partialorder %v176_v43, 0.0 }
  0xc5   :  { %v320_v44 = vpop.eup %319 }
  0xc6   :  { %v178_v45 = vmul.f32 %v320_v44, %v176_v43 }
  0xc8   :  { %v180_v47 = vsel %vm179_vm1, %v176_v43, %v178_v45 }
  0xc9   :  { %v183_v48 = vsel %vm181_vm2, %v182_v46, %v180_v47 }
  0xca   :  { %v189_v49 = vmin.f32 %v183_v48, 0.99999  ;;  %vm186_vm3 = vcmp.gt.f32.partialorder %v183_v48, 0.99999 }
  0xcc   :  { %v307_v50 = vclamps-f32 %v189_v49, 0.9999999 }
  0xce   :  { %v213_v51 = vsub.f32 1.0, %v307_v50  ;;  %v212_v52 = vadd.f32 1.0, %v307_v50 }
  0xd0   :  { %321 = vrcp.f32 %v213_v51 }
  0xd1   :  { %323 = vrcp.f32 %v183_v48 }
  0xdd   :  { %v322_v53 = vpop.eup %321 }
  0xde   :  { %v215_v54 = vmul.f32 %v322_v53, %v212_v52  ;;  %v324_v57 = vpop.eup %323 }
  0xdf   :  { %v187_v60 = vmul.f32 0.99999, %v324_v57  ;;  %v190_v4 = vsel %vm186_vm3, 1.00001, %v324_v57 }
  0xe0   :  { %325 = vlog2.f32 %v215_v54  ;;  %v309_v54 = vld [vmem:[%s463_s2] ss:$0 sm:$0xff] }
  0xe1   :  { %v188_v1 = vsel %vm186_vm3, %v187_v60, 1.0 }
  0xed   :  { %v326_v58 = vpop.eup %325 }
  0xee   :  { %v217_v0 = vmul.f32 0.6931472, %v326_v58 }
  0xf0   :  { %v218_v6 = vmul.f32 0.5, %v217_v0 }
  0xfb   :  { %v447_v38 = vpop.f32.mrf.mxu0 }
  0xfc   :  { %v195_v39 = vmul.f32 %v447_v38, %v447_v38 }
  0xfd   :  { %v163_v40 = vpop.f32.mrf.mxu0 }
  0xfe   :  { %193 = vadd.xlane.f32.xlu1 %v163_v40  ;;  %196 = vadd.xlane.f32.xlu0 %v195_v39 }
 0x187   :  { %v197_v55 = vpop.xlane.xlu0 %196  ;;  %v194_v20 = vpop.xlane.xlu1 %193 }
 0x188   :  { %v198_v56 = vmax.f32 %v197_v55, 1e-15 }
 0x18a   :  { %327 = vrsqrt.f32 %v198_v56  ;;  %vm201_vm4 = vcmp.eq.f32.partialorder %v198_v56, inf  ;;  %v204_v62 = vand.u32 2147483648, %v198_v56  ;;  %vm203_vm5 = vcmp.eq.f32.partialorder %v198_v56, 0.0 }
 0x197   :  { %v328_v59 = vpop.eup %327 }
 0x198   :  { %v200_v61 = vmul.f32 %v328_v59, %v198_v56 }
 0x19a   :  { %v202_v63 = vsel %vm201_vm4, %v198_v56, %v200_v61 }
 0x19b   :  { %v205_v2 = vsel %vm203_vm5, %v204_v62, %v202_v63 }
 0x19c   :  { %v208_v3 = vmul.f32 %v205_v2, %v188_v1 }
 0x19e   :  { %v209_v5 = vmul.f32 %v208_v3, %v190_v4 }
 0x1a0   :  { %v219_v7 = vmul.f32 %v218_v6, %v209_v5 }
 0x1a2   :  { %v308_v8 = vclamps-f32 %v219_v7, 15.0 }
 0x1a4   :  { %329 = vtanh.f32 %v308_v8 }
 0x1b1   :  { %v330_v9 = vpop.eup %329 }
 0x1b2   :  { %v224_v10 = vmax.f32 %v330_v9, 1e-15  ;;  %vm223_vm6 = vcmp.gt.f32.partialorder %v330_v9, 0.99999  ;;  %v231_v15 = vmin.f32 %v330_v9, 0.99999 }
 0x1b4   :  { %331 = vrcp.f32 %v224_v10  ;;  %v232_v18 = vmul.f32 %v231_v15, %v231_v15 }
 0x1b5   :  { %333 = vrcp.f32 %v205_v2 }
 0x1b6   :  { %v238_v23 = vsub.f32 1.0, %v232_v18  ;;  %v239_v31 = vmul.f32 %v236_v24, %v232_v18 }
 0x1b8   :  { %v249_v28 = vmul.f32 %v238_v23, %v238_v23 }
 0x1ba   :  { %v250_v33 = vmul.f32 %v249_v28, %v236_v24 }
 0x1c1   :  { %v332_v11 = vpop.eup %331 }
 0x1c2   :  { %v227_v12 = vmul.f32 0.99999, %v332_v11  ;;  %v334_v16 = vpop.eup %333 }
 0x1c4   :  { %v228_v13 = vsel %vm223_vm6, %v227_v12, 1.0 }
 0x1c5   :  { %v229_v14 = vmul.f32 %v330_v9, %v228_v13 }
 0x1c7   :  { %v230_v17 = vmul.f32 %v334_v16, %v229_v14 }
 0x1c9   :  { %v233_v19 = vmul.f32 2.0, %v230_v17 }
 0x1cb   :  { %v234_v21 = vmul.f32 %v233_v19, %v194_v20 }
 0x1cd   :  { %v235_v22 = vadd.f32 1.0, %v234_v21 }
 0x1cf   :  { %v237_v25 = vadd.f32 %v236_v24, %v235_v22  ;;  %v240_v34 = vadd.f32 %v239_v31, %v235_v22 }
 0x1d1   :  { %v244_v26 = vmul.f32 %v237_v25, %v237_v25  ;;  %v246_v27 = vmul.f32 %v238_v23, %v237_v25  ;;  %v241_v37 = vmax.f32 %v240_v34, 1e-15  ;;  %v268_v51 = vmul.f32 %v237_v25, %v230_v17 }
 0x1d3   :  { %v245_v29 = vmul.f32 %v244_v26, %v232_v18  ;;  %v247_v30 = vmul.f32 %v246_v27, %v234_v21 }
 0x1d5   :  { %v248_v32 = vadd.f32 %v247_v30, %v245_v29 }
 0x1d7   :  { %v251_v35 = vadd.f32 %v250_v33, %v248_v32 }
 0x1d9   :  { %v252_v36 = vmax.f32 %v251_v35, 1e-15 }
 0x1db   :  { %335 = vrsqrt.f32 %v252_v36  ;;  %vm255_vm7 = vcmp.eq.f32.partialorder %v252_v36, inf  ;;  %v258_v41 = vand.u32 2147483648, %v252_v36  ;;  %vm257_vm8 = vcmp.eq.f32.partialorder %v252_v36, 0.0 }
 0x1dc   :  { %337 = vrcp.f32 %v241_v37 }
 0x1e8   :  { %v336_v39 = vpop.eup %335 }
 0x1e9   :  { %v254_v40 = vmul.f32 %v336_v39, %v252_v36  ;;  %v338_v43 = vpop.eup %337 }
 0x1eb   :  { %v256_v42 = vsel %vm255_vm7, %v252_v36, %v254_v40 }
 0x1ec   :  { %v259_v44 = vsel %vm257_vm8, %v258_v41, %v256_v42 }
 0x1ed   :  { %v260_v45 = vmul.f32 %v338_v43, %v259_v44 }
 0x1ef   :  { %v262_v46 = vmax.f32 %v260_v45, 1e-15  ;;  %vm261_vm9 = vcmp.gt.f32.partialorder %v260_v45, 0.99999 }
 0x1f1   :  { %339 = vrcp.f32 %v262_v46 }
 0x1fe   :  { %v340_v47 = vpop.eup %339 }
 0x1ff   :  { %v265_v48 = vmul.f32 0.99999, %v340_v47 }
 0x201   :  { %v266_v49 = vsel %vm261_vm9, %v265_v48, 1.0 }
 0x202   :  { %v267_v50 = vmul.f32 %v338_v43, %v266_v49 }
 0x204   :  { %v270_v52 = vmul.f32 %v267_v50, %v238_v23  ;;  %v269_v53 = vmul.f32 %v268_v51, %v267_v50 }
 0x206   :  { %285 = vperm.xlu0 %318, %v270_v52   ;;  %273 = vperm.xlu1 %317, %v269_v53  }
 0x281   :  { %v286_v55 = vpop.permute.xlu0 %285  ;;  %v274_v56 = vpop.permute.xlu1 %273 }
 0x282   :  { %v288_v57 = vmul.f32 %v309_v54, %v286_v55  ;;  %v276_v58 = vmul.f32 %v274_v56, %v447_v38 }
 0x284   :  { %v289_v59 = vadd.f32 %v288_v57, %v276_v58 }
 0x286   :  { %290 = vst [vmem:[#allocation10] sm:$0xff] %v289_v59 }
 0x287   :  { %392 = shalt.err (!%p389_p0)
}
 0x288   :  { %300 = dma.vmem_to_hbm [thread:$0]  %s298_s29, 128, %s465_s4, [#allocation7]  }
 0x289   :  { %405 = dma.done.wait [#allocation7], 128  }
 0x28a   :  { %406 = vsyncadd [#allocation7], 4294967168 }
 0x28b   :  { %304 = vsyncpa [#allocation6], 1 }
 0x28c   :  { %305 = vsyncpa [#allocation9], 1 }
 0x28d   :  { %306 = vsyncpa [#allocation7], 1 }

</bundles_post_ra>
